<compile_context>
chip_gen: v7x
topology: tpu7x:2x2x1
jax: 0.10.0
libtpu: 0.0.40
codegen_flags: <defaults>
</compile_context>

<pallas_src>
import functools

import jax
import jax.numpy as jnp
from jax.experimental import pallas as pl
from jax.experimental.pallas import tpu as pltpu


def _round_up(x, m):
    return ((x + m - 1) // m) * m


def _lipswish(x):
    return 0.909 * x * jax.nn.sigmoid(x)


def _disc_mlp_kernel(hidden_size, t_ref, h_ref, *refs):
    """Fused cat([t, h]) -> MLP -> tanh.

    refs = (W0p, W1p, ..., W_{L-1}p, out_ref).
    Packed weight layout (built once in pack_discriminator_params):
      W0p : rows [0:hidden)  = h-weights, row hidden = t-column weights, row hidden+1 = bias
      Wip : rows [0:fan_in)  = weights,   row fan_in = bias
    """
    out_ref = refs[-1]
    w_refs = refs[:-1]
    n_linear = len(w_refs)

    t = t_ref[0].astype(jnp.float32)

    # ---- layer 0: th = cat([t, h]) @ W0 + b0, without materializing the concat ----
    w0 = w_refs[0]
    x = jnp.dot(h_ref[...], w0[pl.ds(0, hidden_size), :],
                preferred_element_type=jnp.float32)
    # Fold the time term and bias at (1, mlp) width, then broadcast-add once.
    row0 = (t * w0[pl.ds(hidden_size, 1), :].astype(jnp.float32)
            + w0[pl.ds(hidden_size + 1, 1), :].astype(jnp.float32))
    x = _lipswish(x + row0)

    # ---- hidden layers + final tanh layer ----
    for layer in range(1, n_linear):
        w = w_refs[layer]
        fan_in = w.shape[0] - 1
        x = jnp.dot(x.astype(w.dtype), w[pl.ds(0, fan_in), :],
                    preferred_element_type=jnp.float32)
        x = x + w[pl.ds(fan_in, 1), :].astype(jnp.float32)
        if layer < n_linear - 1:
            x = _lipswish(x)
        else:
            x = jnp.tanh(x)          # MLP(..., tanh=True)

    out_ref[...] = x.astype(out_ref.dtype)


def make_discriminator_func_params(key, data_size, hidden_size, mlp_size, num_layers,
                                   dtype=jnp.float32):
    """PyTorch-Linear-style init: U(-1/sqrt(fan_in), 1/sqrt(fan_in)). Returns [(W, b), ...]."""
    in_size = 1 + hidden_size
    out_size = hidden_size * (1 + data_size)
    dims = [in_size] + [mlp_size] * num_layers + [out_size]
    params = []
    for i in range(len(dims) - 1):
        fan_in, fan_out = dims[i], dims[i + 1]
        key, kw, kb = jax.random.split(key, 3)
        bound = 1.0 / jnp.sqrt(jnp.asarray(fan_in, jnp.float32))
        w = jax.random.uniform(kw, (fan_in, fan_out), dtype, -bound, bound)
        b = jax.random.uniform(kb, (1, fan_out), dtype, -bound, bound)
        params.append((w, b))
    return params


def pack_discriminator_params(params, dtype=None):
    """One-time repack: fold bias into each weight's last row and move W0's t-row after the
    h-rows.  No lane padding of the output dim (masked stores beat 3.2x write inflation).
    Optionally cast to `dtype` (e.g. bf16) for half the weight VMEM / DMA bytes."""
    assert len(params) >= 2, "MLP has at least two linear layers (num_layers >= 1)"
    packed = []
    w0, b0 = params[0]                                    # w0: (1 + hidden, mlp); row 0 is t
    packed.append(jnp.concatenate([w0[1:, :], w0[0:1, :], b0], axis=0))
    for w, b in params[1:]:
        packed.append(jnp.concatenate([w, b], axis=0))
    if dtype is not None:
        packed = [p.astype(dtype) for p in packed]
    return packed


def _choose_batch_block(batch, max_block_rows, sublane, min_blocks):
    """Pick the batch block size: as large as possible (fewer ~0.35us grid steps) while
    minimizing row padding and honoring min_blocks (>=2 lets v7x shard across its 2 TCs)."""
    cap = max(sublane, min(max_block_rows, _round_up(batch, sublane)))
    n_blocks = max(-(-batch // cap), min_blocks)
    bb = min(cap, _round_up(-(-batch // n_blocks), sublane))
    batch_p = _round_up(batch, bb)
    return bb, batch_p


def discriminator_func_forward(t, h, packed_params, data_size, hidden_size,
                               max_block_rows=4096, out_dtype=None):
    """JAX/Pallas equivalent of DiscriminatorFunc.forward(t, h)."""
    batch = h.shape[0]
    out_size = hidden_size * (1 + data_size)
    assert packed_params[-1].shape[1] == out_size
    out_dtype = h.dtype if out_dtype is None else out_dtype

    # sublane granularity: 8 rows for 32-bit, 16 for bf16 (packed sublanes).
    sublane = 8 * max(1, 4 // jnp.dtype(h.dtype).itemsize)
    min_blocks = 2 if batch >= 256 else 1
    bb, batch_p = _choose_batch_block(batch, max_block_rows, sublane, min_blocks)
    h_p = h if batch_p == batch else jnp.pad(h, ((0, batch_p - batch), (0, 0)))

    t_arr = jnp.asarray(t, dtype=jnp.float32).reshape(1,)   # scalar time -> SMEM

    grid = (batch_p // bb,)
    in_specs = [
        pl.BlockSpec(memory_space=pltpu.MemorySpace.SMEM),                 # t (scalar)
        pl.BlockSpec((bb, hidden_size), lambda i: (i, 0)),                 # h rows
    ]
    for p in packed_params:                                                # weights: VMEM-resident
        in_specs.append(pl.BlockSpec(p.shape, lambda i: (0, 0)))

    y = pl.pallas_call(
        functools.partial(_disc_mlp_kernel, hidden_size),
        out_shape=jax.ShapeDtypeStruct((batch_p, out_size), out_dtype),
        grid=grid,
        in_specs=in_specs,
        out_specs=pl.BlockSpec((bb, out_size), lambda i: (i, 0)),
        compiler_params=pltpu.CompilerParams(dimension_semantics=("parallel",)),
    )(t_arr, h_p, *packed_params)

    if batch_p != batch:                                    # drop batch padding only if added
        y = y[:batch]
    # .view(batch, hidden_size, 1 + data_size)
    return y.reshape(batch, hidden_size, 1 + data_size)


def _reference_forward(t, h, params, data_size, hidden_size):
    batch = h.shape[0]
    t_col = jnp.broadcast_to(jnp.asarray(t, h.dtype).reshape(1, 1), (batch, 1))
    x = jnp.concatenate([t_col, h], axis=1)
    n = len(params)
    for i, (w, b) in enumerate(params):
        x = x @ w + b
        x = _lipswish(x) if i < n - 1 else jnp.tanh(x)
    return x.reshape(batch, hidden_size, 1 + data_size)


if __name__ == "__main__":
    data_size = 4
    hidden_size = 8
    mlp_size = 32
    num_layers = 2

    key = jax.random.PRNGKey(0)
    kp, kh1, kh2, kt = jax.random.split(key, 4)

    params = make_discriminator_func_params(kp, data_size, hidden_size, mlp_size, num_layers)
    t = jax.random.uniform(kt, (), jnp.float32)

    # --- test 1: f32, tiny batch (single grid block), tight tolerance ---
    batch1 = 8
    packed_f32 = pack_discriminator_params(params)
    h1 = jax.random.normal(kh1, (batch1, hidden_size), jnp.float32)
    out1 = discriminator_func_forward(t, h1, packed_f32, data_size, hidden_size)
    out1 = jax.block_until_ready(out1)
    ref1 = _reference_forward(t, h1, params, data_size, hidden_size)
    assert out1.shape == (batch1, hidden_size, 1 + data_size), out1.shape
    err1 = float(jnp.max(jnp.abs(out1 - ref1)))
    assert jnp.allclose(out1, ref1, atol=2e-5, rtol=1e-3), err1

    # --- test 2: bf16 weights/activations/output, batch padded + >=2 grid blocks ---
    batch2 = 260
    packed_bf16 = pack_discriminator_params(params, dtype=jnp.bfloat16)
    h2 = jax.random.normal(kh2, (batch2, hidden_size), jnp.float32).astype(jnp.bfloat16)
    out2 = discriminator_func_forward(t, h2, packed_bf16, data_size, hidden_size)
    out2 = jax.block_until_ready(out2)
    ref2 = _reference_forward(t, h2.astype(jnp.float32), params, data_size, hidden_size)
    assert out2.shape == (batch2, hidden_size, 1 + data_size), out2.shape
    err2 = float(jnp.max(jnp.abs(out2.astype(jnp.float32) - ref2)))
    assert jnp.allclose(out2.astype(jnp.float32), ref2, atol=3e-2, rtol=5e-2), err2

    print("KERNEL_OK")
</pallas_src>

<mosaic_0001>
module attributes {stable_mosaic.version = 11 : i64} {
  func.func @_disc_mlp_kernel(%arg0: i32, %arg1: memref<1xf32, #tpu.memory_space<smem>>, %arg2: memref<8x8xf32, #tpu.memory_space<vmem>>, %arg3: memref<10x32xf32, #tpu.memory_space<vmem>>, %arg4: memref<33x32xf32, #tpu.memory_space<vmem>>, %arg5: memref<33x40xf32, #tpu.memory_space<vmem>>, %arg6: memref<8x40xf32, #tpu.memory_space<vmem>>) attributes {dimension_semantics = [#tpu.dimension_semantics<parallel>], iteration_bounds = array<i64: 1>, scalar_prefetch = 0 : i64, scratch_operands = 0 : i64, tpu.core_type = #tpu.core_type<tc>, window_params = [{transform_indices = @transform_0, window_bounds = array<i64: 1>}, {transform_indices = @transform_1, window_bounds = array<i64: 8, 8>}, {pipeline_mode = #tpu.pipeline_mode<synchronous>, transform_indices = @transform_2, window_bounds = array<i64: 10, 32>}, {pipeline_mode = #tpu.pipeline_mode<synchronous>, transform_indices = @transform_3, window_bounds = array<i64: 33, 32>}, {pipeline_mode = #tpu.pipeline_mode<synchronous>, transform_indices = @transform_4, window_bounds = array<i64: 33, 40>}, {transform_indices = @transform_5, window_bounds = array<i64: 8, 40>}]} {
    %c0 = arith.constant 0 : index
    %0 = memref.load %arg1[%c0] : memref<1xf32, #tpu.memory_space<smem>>
    %c0_0 = arith.constant 0 : index
    %c0_1 = arith.constant 0 : index
    %1 = vector.load %arg2[%c0_0, %c0_1] : memref<8x8xf32, #tpu.memory_space<vmem>>, vector<8x8xf32>
    %c0_2 = arith.constant 0 : index
    %c0_3 = arith.constant 0 : index
    %2 = vector.load %arg3[%c0_2, %c0_3] : memref<10x32xf32, #tpu.memory_space<vmem>>, vector<8x32xf32>
    %cst = arith.constant dense<0.000000e+00> : vector<8x32xf32>
    %3 = tpu.matmul %1, %2, %cst {dimension_numbers = #tpu.dot_dimension_numbers<[1], [0], [0], [1], [0, 0, 1, 1], [], []>} : vector<8x8xf32>, vector<8x32xf32>, vector<8x32xf32> -> vector<8x32xf32>
    %c8 = arith.constant 8 : index
    %c0_4 = arith.constant 0 : index
    %4 = vector.load %arg3[%c8, %c0_4] : memref<10x32xf32, #tpu.memory_space<vmem>>, vector<1x32xf32>
    %5 = vector.broadcast %0 : f32 to vector<1x32xf32>
    %6 = arith.mulf %5, %4 : vector<1x32xf32>
    %c9 = arith.constant 9 : index
    %c0_5 = arith.constant 0 : index
    %7 = vector.load %arg3[%c9, %c0_5] : memref<10x32xf32, #tpu.memory_space<vmem>>, vector<1x32xf32>
    %8 = arith.addf %6, %7 : vector<1x32xf32>
    %9 = vector.broadcast %8 : vector<1x32xf32> to vector<8x32xf32>
    %10 = arith.addf %3, %9 : vector<8x32xf32>
    %cst_6 = arith.constant 0.908999979 : f32
    %11 = vector.broadcast %cst_6 : f32 to vector<8x32xf32>
    %12 = arith.mulf %11, %10 : vector<8x32xf32>
    %13 = arith.negf %10 : vector<8x32xf32>
    %14 = math.exp %13 : vector<8x32xf32>
    %cst_7 = arith.constant 1.000000e+00 : f32
    %15 = vector.broadcast %cst_7 : f32 to vector<8x32xf32>
    %16 = arith.addf %15, %14 : vector<8x32xf32>
    %17 = arith.divf %15, %16 : vector<8x32xf32>
    %18 = arith.mulf %12, %17 : vector<8x32xf32>
    %c0_8 = arith.constant 0 : index
    %c0_9 = arith.constant 0 : index
    %19 = vector.load %arg4[%c0_8, %c0_9] : memref<33x32xf32, #tpu.memory_space<vmem>>, vector<32x32xf32>
    %cst_10 = arith.constant dense<0.000000e+00> : vector<8x32xf32>
    %20 = tpu.matmul %18, %19, %cst_10 {dimension_numbers = #tpu.dot_dimension_numbers<[1], [0], [0], [1], [0, 0, 1, 1], [], []>} : vector<8x32xf32>, vector<32x32xf32>, vector<8x32xf32> -> vector<8x32xf32>
    %c32 = arith.constant 32 : index
    %c0_11 = arith.constant 0 : index
    %21 = vector.load %arg4[%c32, %c0_11] : memref<33x32xf32, #tpu.memory_space<vmem>>, vector<1x32xf32>
    %22 = vector.broadcast %21 : vector<1x32xf32> to vector<8x32xf32>
    %23 = arith.addf %20, %22 : vector<8x32xf32>
    %cst_12 = arith.constant 0.908999979 : f32
    %24 = vector.broadcast %cst_12 : f32 to vector<8x32xf32>
    %25 = arith.mulf %24, %23 : vector<8x32xf32>
    %26 = arith.negf %23 : vector<8x32xf32>
    %27 = math.exp %26 : vector<8x32xf32>
    %cst_13 = arith.constant 1.000000e+00 : f32
    %28 = vector.broadcast %cst_13 : f32 to vector<8x32xf32>
    %29 = arith.addf %28, %27 : vector<8x32xf32>
    %30 = arith.divf %28, %29 : vector<8x32xf32>
    %31 = arith.mulf %25, %30 : vector<8x32xf32>
    %c0_14 = arith.constant 0 : index
    %c0_15 = arith.constant 0 : index
    %32 = vector.load %arg5[%c0_14, %c0_15] : memref<33x40xf32, #tpu.memory_space<vmem>>, vector<32x40xf32>
    %cst_16 = arith.constant dense<0.000000e+00> : vector<8x40xf32>
    %33 = tpu.matmul %31, %32, %cst_16 {dimension_numbers = #tpu.dot_dimension_numbers<[1], [0], [0], [1], [0, 0, 1, 1], [], []>} : vector<8x32xf32>, vector<32x40xf32>, vector<8x40xf32> -> vector<8x40xf32>
    %c32_17 = arith.constant 32 : index
    %c0_18 = arith.constant 0 : index
    %34 = vector.load %arg5[%c32_17, %c0_18] : memref<33x40xf32, #tpu.memory_space<vmem>>, vector<1x40xf32>
    %35 = vector.broadcast %34 : vector<1x40xf32> to vector<8x40xf32>
    %36 = arith.addf %33, %35 : vector<8x40xf32>
    %37 = math.tanh %36 : vector<8x40xf32>
    %c0_19 = arith.constant 0 : index
    %c0_20 = arith.constant 0 : index
    %38 = vector.load %arg6[%c0_19, %c0_20] : memref<8x40xf32, #tpu.memory_space<vmem>>, vector<8x40xf32>
    tpu.vector_store %arg6[%c0_19, %c0_20], %37 {strides = array<i32>} : memref<8x40xf32, #tpu.memory_space<vmem>>, vector<8x40xf32>,
    return
  }
  func.func @transform_0(%arg0: i32) -> i32 {
    %c0_i32 = arith.constant 0 : i32
    %c0_i32_0 = arith.constant 0 : i32
    return %c0_i32 : i32
  }
  func.func @transform_1(%arg0: i32) -> (i32, i32) {
    %c0_i32 = arith.constant 0 : i32
    %c0_i32_0 = arith.constant 0 : i32
    return %arg0, %c0_i32 : i32, i32
  }
  func.func @transform_2(%arg0: i32) -> (i32, i32) {
    %c0_i32 = arith.constant 0 : i32
    %c0_i32_0 = arith.constant 0 : i32
    %c0_i32_1 = arith.constant 0 : i32
    return %c0_i32, %c0_i32_0 : i32, i32
  }
  func.func @transform_3(%arg0: i32) -> (i32, i32) {
    %c0_i32 = arith.constant 0 : i32
    %c0_i32_0 = arith.constant 0 : i32
    %c0_i32_1 = arith.constant 0 : i32
    return %c0_i32, %c0_i32_0 : i32, i32
  }
  func.func @transform_4(%arg0: i32) -> (i32, i32) {
    %c0_i32 = arith.constant 0 : i32
    %c0_i32_0 = arith.constant 0 : i32
    %c0_i32_1 = arith.constant 0 : i32
    return %c0_i32, %c0_i32_0 : i32, i32
  }
  func.func @transform_5(%arg0: i32) -> (i32, i32) {
    %c0_i32 = arith.constant 0 : i32
    %c0_i32_0 = arith.constant 0 : i32
    return %arg0, %c0_i32 : i32, i32
  }
}

</mosaic_0001>

<bundles_post_ra>
// kernel: tpu_custom_call.1
= control target key start
LH: loop header
LB: loop body
LE: loop exit
PB: predicated region body
PF: predicated region fallthrough
CT: control target
= control target key end

     0   :  { %vm34_vm0 = vcmask 64512   ;;  %v402_v2 = vmov 0.0   ;;  %vm403_vm1 = vmmov 0   ;;  %s495_s0 = inlined_call_operand.<no memory space> [shape: f32[1], index: 0, kind: input, shape index: {}]   ;;  %s496_s1 = inlined_call_operand.vmem [shape: f32[8,8], index: 1, kind: input, shape index: {}]   ;;  %s497_s2 = inlined_call_operand.vmem [shape: f32[10,32], index: 2, kind: input, shape index: {}]   ;;  %s498_s3 = inlined_call_operand.vmem [shape: f32[33,32], index: 3, kind: input, shape index: {}]   ;;  %s499_s4 = inlined_call_operand.vmem [shape: f32[33,40], index: 4, kind: input, shape index: {}]   ;;  %s500_s5 = inlined_call_operand.hbm [shape: f32[8,40], index: 5, kind: output, shape index: {}]  }
   0x1   :  { %v24_v0 = vld [vmem:[%s497_s2] sm:$0xff]  ;;  %325 = vmatprep.subr.mxu0 %v402_v2  ;;  %327 = vmatprep.mubr.msk.f32.mxu0 %vm403_vm1, %v402_v2 }
   0x2   :  { %v23_v1 = vld [vmem:[%s496_s1] sm:$0xff] }
   0x3   :  { %11 = vsyncpa [#allocation4], 0  ;;  %326 = vmatpush3.msra.mxu0 %v24_v0  ;;  %338 = vmatprep.mubr.msk.f32.mxu1 %vm403_vm1, %v402_v2  ;;  %v116_v3 = vld [vmem:[%s498_s3] sm:$0xff]  ;;  %v117_v4 = vld [vmem:[%s498_s3 + $0x8] sm:$0xff]  ;;  %v404_v6 = vmov 0.0|0.0   ;;  %v30_v10 = vlaneseq  ;;  %v26_v12 = vstv %s495_s0  ;;  %vm125_vm2 = vcmask 261120  }
   0x4   :  { %328 = vmatmul.mubr.msk.f32.vlgmr.msra.gmra.mrb[0].mxu0 %vm34_vm0, %v23_v1  ;;  %v353_v5 = vpack.c.bf16 %v117_v4, %v116_v3  ;;  %352 = vmatprep.subr.bf16.mxu1 %v404_v6  ;;  %v118_v7 = vld [vmem:[%s498_s3 + $0x10] sm:$0xff]  ;;  %v119_v8 = vld [vmem:[%s498_s3 + $0x18] sm:$0xff]  ;;  %v25_v11 = vld [vmem:[%s497_s2 + $0x8] sm:$0x1]  ;;  %vm290_vm3 = vcmask 326656  }
   0x5   :  { %349 = vmatprep.mubr.msk.f32.mxu0 %vm403_vm1, %v402_v2  ;;  %358 = vmatprep.subr.bf16.mxu0 %v404_v6  ;;  %v356_v9 = vpack.c.bf16 %v119_v8, %v118_v7  ;;  %v27_v13 = vmul.f32 %v26_v12, %v25_v11  ;;  %v31_v14 = vshrl.u32 %v30_v10, 7  ;;  %v28_v15 = vld [vmem:[%s497_s2 + $0x9] sm:$0x1]  ;;  %v207_v28 = vld [vmem:[%s499_s4] sm:$0xff]  ;;  %v209_v31 = vld [vmem:[%s499_s4 + $0x10] sm:$0xff] }
   0x6   :  { %354 = vmatpush3.bf16.msra.mxu1 %v353_v5  ;;  %v208_v29 = vld [vmem:[%s499_s4 + $0x8] sm:$0xff]  ;;  %v210_v32 = vld [vmem:[%s499_s4 + $0x18] sm:$0xff]  ;;  %v308_v34 = vld [vmem:[%s498_s3 + $0x20] ss:$0 sm:$0xff]  ;;  %s405_s3 = smov [#allocation3]  }
   0x7   :  { %355 = vmatprep.subr.bf16.mxu1 %v404_v6  ;;  %v29_v16 = vadd.f32 %v28_v15, %v27_v13  ;;  %v32_v17 = vsub.s32 0, %v31_v14  ;;  %v359_v30 = vpack.c.bf16 %v208_v29, %v207_v28  ;;  %v362_v33 = vpack.c.bf16 %v210_v32, %v209_v31  ;;  %v311_v44 = vld [vmem:[%s499_s4 + $0x20] ss:$0 sm:$0xff]  ;;  %s298_s20 = sshll.u32 %s405_s3, 4  ;;  %s299_s20 = int_to_ptr.vmem [resolvable:$true] %s298_s20 }
   0x8   :  { %s378_s21 = scalar_lea.vmem %s299_s20, 128  ;;  %p383_p1 = scmp.lt.s32.totalorder %s299_s20, %s299_s20 }
   0x9   :  { %v33_v18 = vrot.slane %v29_v16, %v32_v17  ;;  %360 = vmatpush3.bf16.msra.mxu0 %v359_v30  ;;  %p379_p0 = scmp.ne.s32.totalorder %s299_s20, %s378_s21  ;;  %p384_p2 = scmp.lt.s32.totalorder %s378_s21, %s378_s21 }
   0xa   :  { %357 = vmatpush3.bf16.msra.mxu1 %v356_v9  ;;  %361 = vmatprep.subr.bf16.mxu0 %v404_v6 }
   0xb   :  { %p385_p3 = por %p384_p2, %p383_p1 }
   0xd   :  { %363 = vmatpush3.bf16.msra.mxu0 %v362_v33  ;;  %p386_p4 = pnand %p385_p3, %p379_p0 }
  0xd7   :  { %v104_v19 = vpop.f32.mrb[0].mxu0 }
  0xd8   :  { %v105_v20 = vadd.f32 %v104_v19, %v33_v18  ;;  %v329_v21 = vpop.f32.mrb[1].mxu0 }
  0xda   :  { %v307_v22 = vmul.f32 -1.442695, %v105_v20  ;;  %v108_v25 = vmul.f32 0.909, %v105_v20 }
  0xdc   :  { %368 = vpow2.f32 %v307_v22 }
  0xe6   :  { %v369_v23 = vpop.eup %368 }
  0xe7   :  { %v112_v24 = vadd.f32 1.0, %v369_v23 }
  0xe9   :  { %370 = vrcp.f32 %v112_v24 }
  0xf3   :  { %v371_v26 = vpop.eup %370 }
  0xf4   :  { %v115_v27 = vmul.f32 %v371_v26, %v108_v25 }
  0xf6   :  { %339 = vmatmul.mubr.msk.f32.vlgmr.msra.gmra.mrb[0].mxu1 %vm125_vm2, %v115_v27 }
 0x1c9   :  { %v195_v35 = vpop.f32.mrb[0].mxu1 }
 0x1ca   :  { %v196_v36 = vadd.f32 %v308_v34, %v195_v35  ;;  %v340_v37 = vpop.f32.mrb[1].mxu1 }
 0x1cc   :  { %v310_v38 = vmul.f32 -1.442695, %v196_v36  ;;  %v199_v41 = vmul.f32 0.909, %v196_v36 }
 0x1ce   :  { %372 = vpow2.f32 %v310_v38 }
 0x1d8   :  { %v373_v39 = vpop.eup %372 }
 0x1d9   :  { %v203_v40 = vadd.f32 1.0, %v373_v39 }
 0x1db   :  { %374 = vrcp.f32 %v203_v40 }
 0x1e5   :  { %v375_v42 = vpop.eup %374 }
 0x1e6   :  { %v206_v43 = vmul.f32 %v375_v42, %v199_v41 }
 0x1e8   :  { %350 = vmatmul.mubr.msk.f32.vlgmr.msra.gmra.mrb[2].mxu0 %vm125_vm2, %v206_v43 }
 0x2bb   :  { %v285_v45 = vpop.f32.mrb[2].mxu0 }
 0x2bc   :  { %v286_v46 = vadd.f32 %v311_v44, %v285_v45  ;;  %v351_v47 = vpop.f32.mrb[3].mxu0 }
 0x2be   :  { %376 = vtanh.f32 %v286_v46 }
 0x2c8   :  { %v377_v48 = vpop.eup %376 }
 0x2c9   :  { %291 = vst.msk [vmem:[#allocation3] sm:$0xff] %vm290_vm3, %v377_v48 }
 0x2ca   :  { %389 = shalt.err (!%p386_p4)
}
 0x2cb   :  { %s390_s4 = scalar_lea.hbm %s500_s5, 128 }
 0x2cc   :  { %p391_p5 = scmp.ne.s32.totalorder %s500_s5, %s390_s4  ;;  %p394_p6 = scmp.lt.u32.totalorder %s390_s4, %s500_s5 }
 0x2ce   :  { %p396_p7 = pnand %p394_p6, %p391_p5 }
 0x2d0   :  { %399 = shalt.err (!%p396_p7)
}
 0x2d1   :  { %301 = dma.vmem_to_hbm [thread:$0]  %s299_s20, 128, %s500_s5, [#allocation4]  }
 0x2d2   :  { %400 = dma.done.wait [#allocation4], 128  }
 0x2d3   :  { %401 = vsyncadd [#allocation4], 4294967168 }
 0x2d4   :  { %305 = vsyncpa [#allocation4], 1 }

</bundles_post_ra>
